<compile_context>
chip_gen: v5e
topology: v5e:2x2
jax: 0.10.0
libtpu: 0.0.40
codegen_flags: <defaults>
</compile_context>

<pallas_src>
import jax
import jax.numpy as jnp
from jax.experimental import pallas as pl
from jax.experimental.pallas import tpu as pltpu

# Walker2d-v2 dimensions (obs=17, action=6); synthetic, no gym needed.
N_S = 17
N_A = 6
HIDDEN = 64
HEAD_ROWS = 2 * N_A      # mu | log_sigma stacked along the sublane axis
HEAD_PAD = 16            # sublane-rounded head rows (12 -> 16, rows 12..15 are zero)


def _round_up(x, m):
    return ((x + m - 1) // m) * m


def actor_kernel(s_ref, w1t_ref, b1t_ref, w2t_ref, b2t_ref, wht_ref, bht_ref, out_ref):
    """Fused 3-layer MLP, feature-major.

    s_ref   : (TM, N_S)        row-major observation tile (batch in sublanes)
    w1t_ref : (HIDDEN, N_S)    fc1 weight transposed
    w2t_ref : (HIDDEN, HIDDEN) fc2 weight transposed
    wht_ref : (HEAD_PAD, HIDDEN) fused head weight; rows [0,N_A)=mu, [N_A,2N_A)=sigma
    out_ref : (HEAD_PAD, TM)   feature-major output slab (batch in lanes)
    """
    s = s_ref[...]
    # h1^T = tanh(W1 s^T + b1): NT matmul keeps s in its natural row-major layout.
    h1 = jnp.tanh(
        jax.lax.dot_general(
            w1t_ref[...], s,
            dimension_numbers=(((1,), (1,)), ((), ())),
            preferred_element_type=jnp.float32)
        + b1t_ref[...])                                          # (HIDDEN, TM)
    h2 = jnp.tanh(
        jnp.dot(w2t_ref[...], h1, preferred_element_type=jnp.float32)
        + b2t_ref[...])                                          # (HIDDEN, TM)
    head = (jnp.dot(wht_ref[...], h2, preferred_element_type=jnp.float32)
            + bht_ref[...])                                      # (HEAD_PAD, TM)

    row = jax.lax.broadcasted_iota(jnp.int32, head.shape, dimension=0)
    is_sigma = (row >= N_A) & (row < HEAD_ROWS)
    out_ref[...] = jnp.where(is_sigma, jnp.exp(head), head).astype(out_ref.dtype)


def _tiling(B, tm_max):
    """Pick (num_tiles, TM, B_pad); the batch lives on the lane axis of the output."""
    b8 = _round_up(max(B, 1), 8)
    if b8 <= 256:
        # Single full-array tile: block == array, so no 128-lane divisibility needed.
        return 1, b8, b8
    nt = max(2, pl.cdiv(b8, tm_max))          # >= 2 tiles so both v7x TCs get work
    tm = _round_up(pl.cdiv(b8, nt), 128)      # balanced tiles, 128-lane granularity
    nt = pl.cdiv(b8, tm)                      # drop empty trailing tiles
    return nt, tm, nt * tm


def actor_forward(s, kparams, *, tm_max=4096):
    """s: [B, N_S] f32 -> (mu [B, N_A], sigma [B, N_A]). kparams = pack_params(...)."""
    B = s.shape[0]
    nt, TM, B_pad = _tiling(B, tm_max)
    if B_pad != B:
        s = jnp.pad(s, ((0, B_pad - B), (0, 0)))

    flops = 2 * B_pad * (N_S * HIDDEN + HIDDEN * HIDDEN + HIDDEN * HEAD_PAD)
    transcendentals = B_pad * (2 * HIDDEN + HEAD_PAD)
    bytes_accessed = 4 * (B_pad * N_S + B_pad * HEAD_PAD
                          + HIDDEN * (N_S + 1) + HIDDEN * (HIDDEN + 1)
                          + HEAD_PAD * (HIDDEN + 1))

    out = pl.pallas_call(
        actor_kernel,
        out_shape=jax.ShapeDtypeStruct((HEAD_PAD, B_pad), jnp.float32),
        grid_spec=pltpu.PrefetchScalarGridSpec(
            num_scalar_prefetch=0,
            grid=(nt,),
            in_specs=[
                pl.BlockSpec((TM, N_S), lambda i: (i, 0)),           # obs row tiles
                pl.BlockSpec((HIDDEN, N_S), lambda i: (0, 0)),       # w1^T (resident)
                pl.BlockSpec((HIDDEN, 1), lambda i: (0, 0)),         # b1
                pl.BlockSpec((HIDDEN, HIDDEN), lambda i: (0, 0)),    # w2^T
                pl.BlockSpec((HIDDEN, 1), lambda i: (0, 0)),         # b2
                pl.BlockSpec((HEAD_PAD, HIDDEN), lambda i: (0, 0)),  # fused head W^T
                pl.BlockSpec((HEAD_PAD, 1), lambda i: (0, 0)),       # fused head b
            ],
            out_specs=pl.BlockSpec((HEAD_PAD, TM), lambda i: (0, i)),
        ),
        compiler_params=pltpu.CompilerParams(
            dimension_semantics=("parallel",)),
        cost_estimate=pl.CostEstimate(
            flops=flops,
            transcendentals=transcendentals,
            bytes_accessed=bytes_accessed),
    )(s,
      kparams["w1t"], kparams["b1t"],
      kparams["w2t"], kparams["b2t"],
      kparams["wht"], kparams["bht"])

    mu = out[:N_A, :B].T
    sigma = out[N_A:HEAD_ROWS, :B].T
    return mu, sigma


def init_params(key):
    """Torch-shaped params: weights ~ N(0, 0.1), biases 0, mu weight *= 0.1."""
    k1, k2, k3, k4 = jax.random.split(key, 4)
    std = 0.1
    w1 = std * jax.random.normal(k1, (N_S, HIDDEN), jnp.float32)
    w2 = std * jax.random.normal(k2, (HIDDEN, HIDDEN), jnp.float32)
    wsig = std * jax.random.normal(k3, (HIDDEN, N_A), jnp.float32)
    wmu = std * jax.random.normal(k4, (HIDDEN, N_A), jnp.float32) * 0.1
    return {
        "w1": w1, "b1": jnp.zeros((HIDDEN,), jnp.float32),
        "w2": w2, "b2": jnp.zeros((HIDDEN,), jnp.float32),
        "wmu": wmu, "bmu": jnp.zeros((N_A,), jnp.float32),
        "wsig": wsig, "bsig": jnp.zeros((N_A,), jnp.float32),
    }


def pack_params(p):
    """Transpose to feature-major and fuse mu|sigma heads into one 16-row slab."""
    wht = (jnp.zeros((HEAD_PAD, HIDDEN), jnp.float32)
           .at[:N_A, :].set(p["wmu"].T)
           .at[N_A:HEAD_ROWS, :].set(p["wsig"].T))
    bht = (jnp.zeros((HEAD_PAD, 1), jnp.float32)
           .at[:N_A, 0].set(p["bmu"])
           .at[N_A:HEAD_ROWS, 0].set(p["bsig"]))
    return {
        "w1t": p["w1"].T, "b1t": p["b1"].reshape(HIDDEN, 1),
        "w2t": p["w2"].T, "b2t": p["b2"].reshape(HIDDEN, 1),
        "wht": wht, "bht": bht,
    }


def actor_reference(s, p):
    h1 = jnp.tanh(s @ p["w1"] + p["b1"])
    h2 = jnp.tanh(h1 @ p["w2"] + p["b2"])
    mu = h2 @ p["wmu"] + p["bmu"]
    sigma = jnp.exp(h2 @ p["wsig"] + p["bsig"])
    return mu, sigma


if __name__ == "__main__":
    key = jax.random.PRNGKey(0)
    pkey, skey1, skey2 = jax.random.split(key, 3)
    params = init_params(pkey)
    kparams = pack_params(params)

    fwd = jax.jit(actor_forward)

    # Small interactive batch (RL sampling path): single full-array tile.
    B = 8
    s_small = jax.random.normal(skey1, (B, N_S), jnp.float32)
    mu, sigma = fwd(s_small, kparams)
    jax.block_until_ready((mu, sigma))
    mu_ref, sigma_ref = actor_reference(s_small, params)
    assert mu.shape == (B, N_A) and sigma.shape == (B, N_A)
    assert jnp.allclose(mu, mu_ref, atol=1e-5, rtol=1e-5)
    assert jnp.allclose(sigma, sigma_ref, atol=1e-5, rtol=1e-5)
    assert bool(jnp.all(sigma > 0))

    # Multi-tile path: exercises lane padding + a >=2-step grid (v7x megacore).
    B2 = 300
    s_big = jax.random.normal(skey2, (B2, N_S), jnp.float32)
    mu2, sigma2 = fwd(s_big, kparams)
    jax.block_until_ready((mu2, sigma2))
    mu2_ref, sigma2_ref = actor_reference(s_big, params)
    assert mu2.shape == (B2, N_A) and sigma2.shape == (B2, N_A)
    assert jnp.allclose(mu2, mu2_ref, atol=1e-5, rtol=1e-5)
    assert jnp.allclose(sigma2, sigma2_ref, atol=1e-5, rtol=1e-5)
    assert bool(jnp.all(sigma2 > 0))

    print("KERNEL_OK")
</pallas_src>

<mosaic_0001>
module attributes {stable_mosaic.version = 11 : i64} {
  func.func @actor_kernel(%arg0: i32, %arg1: memref<8x17xf32, #tpu.memory_space<vmem>>, %arg2: memref<64x17xf32, #tpu.memory_space<vmem>>, %arg3: memref<64x1xf32, #tpu.memory_space<vmem>>, %arg4: memref<64x64xf32, #tpu.memory_space<vmem>>, %arg5: memref<64x1xf32, #tpu.memory_space<vmem>>, %arg6: memref<16x64xf32, #tpu.memory_space<vmem>>, %arg7: memref<16x1xf32, #tpu.memory_space<vmem>>, %arg8: memref<16x8xf32, #tpu.memory_space<vmem>>) attributes {dimension_semantics = [#tpu.dimension_semantics<parallel>], iteration_bounds = array<i64: 1>, scalar_prefetch = 0 : i64, scratch_operands = 0 : i64, tpu.core_type = #tpu.core_type<tc>, window_params = [{transform_indices = @transform_0, window_bounds = array<i64: 8, 17>}, {pipeline_mode = #tpu.pipeline_mode<synchronous>, transform_indices = @transform_1, window_bounds = array<i64: 64, 17>}, {pipeline_mode = #tpu.pipeline_mode<synchronous>, transform_indices = @transform_2, window_bounds = array<i64: 64, 1>}, {pipeline_mode = #tpu.pipeline_mode<synchronous>, transform_indices = @transform_3, window_bounds = array<i64: 64, 64>}, {pipeline_mode = #tpu.pipeline_mode<synchronous>, transform_indices = @transform_4, window_bounds = array<i64: 64, 1>}, {pipeline_mode = #tpu.pipeline_mode<synchronous>, transform_indices = @transform_5, window_bounds = array<i64: 16, 64>}, {pipeline_mode = #tpu.pipeline_mode<synchronous>, transform_indices = @transform_6, window_bounds = array<i64: 16, 1>}, {transform_indices = @transform_7, window_bounds = array<i64: 16, 8>}]} {
    %c0 = arith.constant 0 : index
    %c0_0 = arith.constant 0 : index
    %0 = vector.load %arg1[%c0, %c0_0] : memref<8x17xf32, #tpu.memory_space<vmem>>, vector<8x17xf32>
    %c0_1 = arith.constant 0 : index
    %c0_2 = arith.constant 0 : index
    %1 = vector.load %arg2[%c0_1, %c0_2] : memref<64x17xf32, #tpu.memory_space<vmem>>, vector<64x17xf32>
    %cst = arith.constant dense<0.000000e+00> : vector<64x8xf32>
    %2 = tpu.matmul %1, %0, %cst {dimension_numbers = #tpu.dot_dimension_numbers<[1], [1], [0], [0], [0, 0, 1, 0], [], []>} : vector<64x17xf32>, vector<8x17xf32>, vector<64x8xf32> -> vector<64x8xf32>
    %c0_3 = arith.constant 0 : index
    %c0_4 = arith.constant 0 : index
    %3 = vector.load %arg3[%c0_3, %c0_4] : memref<64x1xf32, #tpu.memory_space<vmem>>, vector<64x1xf32>
    %4 = vector.broadcast %3 : vector<64x1xf32> to vector<64x8xf32>
    %5 = arith.addf %2, %4 : vector<64x8xf32>
    %6 = math.tanh %5 : vector<64x8xf32>
    %c0_5 = arith.constant 0 : index
    %c0_6 = arith.constant 0 : index
    %7 = vector.load %arg4[%c0_5, %c0_6] : memref<64x64xf32, #tpu.memory_space<vmem>>, vector<64x64xf32>
    %cst_7 = arith.constant dense<0.000000e+00> : vector<64x8xf32>
    %8 = tpu.matmul %7, %6, %cst_7 {dimension_numbers = #tpu.dot_dimension_numbers<[1], [0], [0], [1], [0, 0, 1, 1], [], []>} : vector<64x64xf32>, vector<64x8xf32>, vector<64x8xf32> -> vector<64x8xf32>
    %c0_8 = arith.constant 0 : index
    %c0_9 = arith.constant 0 : index
    %9 = vector.load %arg5[%c0_8, %c0_9] : memref<64x1xf32, #tpu.memory_space<vmem>>, vector<64x1xf32>
    %10 = vector.broadcast %9 : vector<64x1xf32> to vector<64x8xf32>
    %11 = arith.addf %8, %10 : vector<64x8xf32>
    %12 = math.tanh %11 : vector<64x8xf32>
    %c0_10 = arith.constant 0 : index
    %c0_11 = arith.constant 0 : index
    %13 = vector.load %arg6[%c0_10, %c0_11] : memref<16x64xf32, #tpu.memory_space<vmem>>, vector<16x64xf32>
    %cst_12 = arith.constant dense<0.000000e+00> : vector<16x8xf32>
    %14 = tpu.matmul %13, %12, %cst_12 {dimension_numbers = #tpu.dot_dimension_numbers<[1], [0], [0], [1], [0, 0, 1, 1], [], []>} : vector<16x64xf32>, vector<64x8xf32>, vector<16x8xf32> -> vector<16x8xf32>
    %c0_13 = arith.constant 0 : index
    %c0_14 = arith.constant 0 : index
    %15 = vector.load %arg7[%c0_13, %c0_14] : memref<16x1xf32, #tpu.memory_space<vmem>>, vector<16x1xf32>
    %16 = vector.broadcast %15 : vector<16x1xf32> to vector<16x8xf32>
    %17 = arith.addf %14, %16 : vector<16x8xf32>
    %18 = tpu.iota {dimensions = array<i32: 0>} : vector<16x8xi32>
    %c6_i32 = arith.constant 6 : i32
    %19 = vector.broadcast %c6_i32 : i32 to vector<16x8xi32>
    %20 = arith.cmpi sge, %18, %19 : vector<16x8xi32>
    %c12_i32 = arith.constant 12 : i32
    %21 = vector.broadcast %c12_i32 : i32 to vector<16x8xi32>
    %22 = arith.cmpi slt, %18, %21 : vector<16x8xi32>
    %23 = arith.andi %20, %22 : vector<16x8xi1>
    %24 = math.exp %17 : vector<16x8xf32>
    %25 = arith.select %23, %24, %17 : vector<16x8xi1>, vector<16x8xf32>
    %c0_15 = arith.constant 0 : index
    %c0_16 = arith.constant 0 : index
    %26 = vector.load %arg8[%c0_15, %c0_16] : memref<16x8xf32, #tpu.memory_space<vmem>>, vector<16x8xf32>
    tpu.vector_store %arg8[%c0_15, %c0_16], %25 {strides = array<i32>} : memref<16x8xf32, #tpu.memory_space<vmem>>, vector<16x8xf32>,
    return
  }
  func.func @transform_0(%arg0: i32) -> (i32, i32) {
    %c0_i32 = arith.constant 0 : i32
    %c0_i32_0 = arith.constant 0 : i32
    return %arg0, %c0_i32 : i32, i32
  }
  func.func @transform_1(%arg0: i32) -> (i32, i32) {
    %c0_i32 = arith.constant 0 : i32
    %c0_i32_0 = arith.constant 0 : i32
    %c0_i32_1 = arith.constant 0 : i32
    return %c0_i32, %c0_i32_0 : i32, i32
  }
  func.func @transform_2(%arg0: i32) -> (i32, i32) {
    %c0_i32 = arith.constant 0 : i32
    %c0_i32_0 = arith.constant 0 : i32
    %c0_i32_1 = arith.constant 0 : i32
    return %c0_i32, %c0_i32_0 : i32, i32
  }
  func.func @transform_3(%arg0: i32) -> (i32, i32) {
    %c0_i32 = arith.constant 0 : i32
    %c0_i32_0 = arith.constant 0 : i32
    %c0_i32_1 = arith.constant 0 : i32
    return %c0_i32, %c0_i32_0 : i32, i32
  }
  func.func @transform_4(%arg0: i32) -> (i32, i32) {
    %c0_i32 = arith.constant 0 : i32
    %c0_i32_0 = arith.constant 0 : i32
    %c0_i32_1 = arith.constant 0 : i32
    return %c0_i32, %c0_i32_0 : i32, i32
  }
  func.func @transform_5(%arg0: i32) -> (i32, i32) {
    %c0_i32 = arith.constant 0 : i32
    %c0_i32_0 = arith.constant 0 : i32
    %c0_i32_1 = arith.constant 0 : i32
    return %c0_i32, %c0_i32_0 : i32, i32
  }
  func.func @transform_6(%arg0: i32) -> (i32, i32) {
    %c0_i32 = arith.constant 0 : i32
    %c0_i32_0 = arith.constant 0 : i32
    %c0_i32_1 = arith.constant 0 : i32
    return %c0_i32, %c0_i32_0 : i32, i32
  }
  func.func @transform_7(%arg0: i32) -> (i32, i32) {
    %c0_i32 = arith.constant 0 : i32
    %c0_i32_0 = arith.constant 0 : i32
    return %c0_i32, %arg0 : i32, i32
  }
}

</mosaic_0001>

<bundles_post_ra>
// kernel: actor_forward.1
= control target key start
LH: loop header
LB: loop body
LE: loop exit
PB: predicated region body
PF: predicated region fallthrough
CT: control target
= control target key end

     0   :  { %vm83_vm0 = vcmask 138240   ;;  %v423_v0 = vmov 0   ;;  %vm216_vm1 = vcmask 523264   ;;  %vm348_vm3 = vcmask 64512   ;;  %s601_s2 = inlined_call_operand.vmem [shape: f32[64,1], index: 2, kind: input, shape index: {}]   ;;  %s602_s0 = inlined_call_operand.vmem [shape: f32[8,17], index: 0, kind: input, shape index: {}]   ;;  %s603_s1 = inlined_call_operand.vmem [shape: f32[64,17], index: 1, kind: input, shape index: {}]   ;;  %s604_s4 = inlined_call_operand.vmem [shape: f32[64,1], index: 4, kind: input, shape index: {}]   ;;  %s605_s6 = inlined_call_operand.vmem [shape: f32[16,1], index: 6, kind: input, shape index: {}]   ;;  %s606_s3 = inlined_call_operand.vmem [shape: f32[64,64], index: 3, kind: input, shape index: {}]   ;;  %s607_s5 = inlined_call_operand.vmem [shape: f32[16,64], index: 5, kind: input, shape index: {}]   ;;  %s608_s7 = inlined_call_operand.vmem [shape: f32[16,8], index: 7, kind: output, shape index: {}]  }
   0x1   :  { %385 = vset.pattern.permute.xlu1 %v423_v0  ;;  %v40_v1 = vld [vmem:[%s601_s2 + $0x28] sm:$0xff]  ;;  %v26_v2 = vld [vmem:[%s602_s0] sm:$0xff]  ;;  %384 = vset.pattern.permute.xlu0 %v423_v0  ;;  %v42_v4 = vld [vmem:[%s601_s2 + $0x38] sm:$0xff] }
   0x2   :  { %70 = vperm.xlu1 %385, %v40_v1   ;;  %355 = vmatpush.xpose.msk.msra.mxu0 %vm83_vm0, %v26_v2  ;;  %v27_v3 = vld [vmem:[%s603_s1] sm:$0xff]  ;;  %v33_v5 = vld [vmem:[%s603_s1 + $0x30] sm:$0xff]  ;;  %v38_v6 = vld [vmem:[%s601_s2 + $0x18] sm:$0xff] }
   0x3   :  { %80 = vperm.xlu0 %384, %v42_v4   ;;  %374 = vmatpush.xpose.msk.msra.mxu2 %vm83_vm0, %v26_v2  ;;  %v39_v7 = vld [vmem:[%s601_s2 + $0x20] sm:$0xff]  ;;  %v41_v8 = vld [vmem:[%s601_s2 + $0x30] sm:$0xff]  ;;  %v28_v9 = vld [vmem:[%s603_s1 + $0x8] sm:$0xff] }
   0x4   :  { %386 = vset.pattern.permute.xlu2 %v423_v0  ;;  %v34_v10 = vld [vmem:[%s603_s1 + $0x38] sm:$0xff]  ;;  %v37_v11 = vld [vmem:[%s601_s2 + $0x10] sm:$0xff]  ;;  %v35_v12 = vld [vmem:[%s601_s2] sm:$0xff] }
   0x5   :  { %356 = vmatmul.msk.f32.vlgmr.msra.gmra.mxu0 %vm83_vm0, %v27_v3  ;;  %60 = vperm.xlu2 %386, %v38_v6   ;;  %v36_v13 = vld [vmem:[%s601_s2 + $0x8] sm:$0xff]  ;;  %v29_v14 = vld [vmem:[%s603_s1 + $0x10] sm:$0xff]  ;;  %v175_v15 = vld [vmem:[%s604_s4 + $0x38] sm:$0xff] }
   0x6   :  { %362 = vmatmul.msk.f32.vlgmr.msra.gmra.mxu2 %vm83_vm0, %v33_v5  ;;  %v173_v16 = vld [vmem:[%s604_s4 + $0x28] sm:$0xff]  ;;  %v174_v17 = vld [vmem:[%s604_s4 + $0x30] sm:$0xff]  ;;  %v30_v18 = vld [vmem:[%s603_s1 + $0x18] sm:$0xff] }
   0x7   :  { %v172_v19 = vld [vmem:[%s604_s4 + $0x20] sm:$0xff]  ;;  %v170_v20 = vld [vmem:[%s604_s4 + $0x10] sm:$0xff]  ;;  %v171_v21 = vld [vmem:[%s604_s4 + $0x18] sm:$0xff] }
   0x8   :  { %v31_v22 = vld [vmem:[%s603_s1 + $0x20] sm:$0xff]  ;;  %v169_v23 = vld [vmem:[%s604_s4 + $0x8] sm:$0xff]  ;;  %v166_v63 = vld [vmem:[%s606_s3 + $0x30] sm:$0xff] }
   0x9   :  { %v292_v24 = vld [vmem:[%s605_s6] sm:$0xff]  ;;  %v32_v26 = vld [vmem:[%s603_s1 + $0x28] sm:$0xff]  ;;  %v162_v0 = vld [vmem:[%s606_s3 + $0x10] sm:$0xff] }
   0xa   :  { %65 = vperm.xlu1 %385, %v39_v7   ;;  %v168_v25 = vld [vmem:[%s604_s4] sm:$0xff]  ;;  %v293_v27 = vld [vmem:[%s605_s6 + $0x8] sm:$0xff]  ;;  %v167_v1 = vld [vmem:[%s606_s3 + $0x38] sm:$0xff] }
   0xb   :  { %75 = vperm.xlu0 %384, %v41_v8   ;;  %v160_v59 = vld [vmem:[%s606_s3] sm:$0xff]  ;;  %v165_v60 = vld [vmem:[%s606_s3 + $0x28] sm:$0xff]  ;;  %v163_v2 = vld [vmem:[%s606_s3 + $0x18] sm:$0xff] }
   0xc   :  { %v161_v62 = vld [vmem:[%s606_s3 + $0x8] sm:$0xff]  ;;  %v164_v3 = vld [vmem:[%s606_s3 + $0x20] sm:$0xff] }
   0xd   :  { %357 = vmatmul.msk.f32.gmra.mxu0 %vm83_vm0, %v28_v9  ;;  %55 = vperm.xlu2 %386, %v37_v11  }
   0xe   :  { %363 = vmatmul.msk.f32.gmra.mxu2 %vm83_vm0, %v34_v10 }
  0x12   :  { %45 = vperm.xlu1 %385, %v35_v12  }
  0x13   :  { %50 = vperm.xlu0 %384, %v36_v13  }
  0x15   :  { %358 = vmatmul.msk.f32.gmra.mxu0 %vm83_vm0, %v29_v14  ;;  %213 = vperm.xlu2 %386, %v175_v15  }
  0x1a   :  { %203 = vperm.xlu1 %385, %v173_v16  }
  0x1b   :  { %208 = vperm.xlu0 %384, %v174_v17  }
  0x1d   :  { %359 = vmatmul.msk.f32.gmra.mxu0 %vm83_vm0, %v30_v18  ;;  %198 = vperm.xlu2 %386, %v172_v19  }
  0x22   :  { %188 = vperm.xlu1 %385, %v170_v20  }
  0x23   :  { %193 = vperm.xlu0 %384, %v171_v21  }
  0x25   :  { %360 = vmatmul.msk.f32.gmra.mxu0 %vm83_vm0, %v31_v22  ;;  %183 = vperm.xlu2 %386, %v169_v23  }
  0x2a   :  { %296 = vperm.xlu1 %385, %v292_v24  }
  0x2b   :  { %178 = vperm.xlu0 %384, %v168_v25  }
  0x2d   :  { %361 = vmatmul.msk.f32.gmra.mxu0 %vm83_vm0, %v32_v26  ;;  %301 = vperm.xlu2 %386, %v293_v27  }
  0x5f   :  { %v61_v42 = vpop.permute.xlu2 %60 }
  0x67   :  { %v56_v48 = vpop.permute.xlu2 %55 }
  0x6f   :  { %v214_v8 = vpop.permute.xlu2 %213 }
  0x74   :  { %v71_v40 = vpop.permute.xlu1 %70 }
  0x75   :  { %v81_v29 = vpop.permute.xlu0 %80 }
  0x77   :  { %v199_v17 = vpop.permute.xlu2 %198 }
  0x7c   :  { %v66_v43 = vpop.permute.xlu1 %65 }
  0x7d   :  { %v76_v32 = vpop.permute.xlu0 %75 }
  0x7f   :  { %v184_v27 = vpop.permute.xlu2 %183 }
  0x82   :  { %v128_v28 = vpop.f32.mrf.mxu0 }
  0x84   :  { %v46_v50 = vpop.permute.xlu1 %45 }
  0x85   :  { %v51_v51 = vpop.permute.xlu0 %50  ;;  %v129_v54 = vadd.f32 %v128_v28, %v46_v50 }
  0x89   :  { %v146_v30 = vpop.f32.mrf.mxu2 }
  0x8a   :  { %v131_v31 = vpop.f32.mrf.mxu0  ;;  %v147_v33 = vadd.f32 %v146_v30, %v76_v32 }
  0x8b   :  { %v132_v52 = vadd.f32 %v131_v31, %v51_v51 }
  0x8c   :  { %387 = vtanh.f32 %v147_v33  ;;  %v204_v14 = vpop.permute.xlu1 %203 }
  0x8d   :  { %v209_v10 = vpop.permute.xlu0 %208 }
  0x91   :  { %v149_v34 = vpop.f32.mrf.mxu2 }
  0x92   :  { %v134_v35 = vpop.f32.mrf.mxu0  ;;  %v150_v36 = vadd.f32 %v149_v34, %v81_v29  ;;  %v388_v37 = vpop.eup %387 }
  0x93   :  { %v135_v49 = vadd.f32 %v134_v35, %v56_v48  ;;  %v290_v35 = vld [vmem:[%s607_s5] sm:$0xff] }
  0x94   :  { %389 = vtanh.f32 %v150_v36  ;;  %v189_v24 = vpop.permute.xlu1 %188 }
  0x95   :  { %v194_v18 = vpop.permute.xlu0 %193 }
  0x9a   :  { %v390_v38 = vpop.eup %389  ;;  %v137_v39 = vpop.f32.mrf.mxu0 }
  0x9b   :  { %249 = vmatpush.msra.mxu1 %v390_v38  ;;  %375 = vmatpush.msra.mxu3 %v390_v38  ;;  %v138_v47 = vadd.f32 %v137_v39, %v61_v42 }
  0x9c   :  { %v297_v38 = vpop.permute.xlu1 %296 }
  0x9d   :  { %250 = vmatpush.msra.mxu1 %v388_v37  ;;  %376 = vmatpush.msra.mxu3 %v388_v37  ;;  %v179_v29 = vpop.permute.xlu0 %178  ;;  %v291_v37 = vld [vmem:[%s607_s5 + $0x8] sm:$0xff] }
  0xa2   :  { %v140_v41 = vpop.f32.mrf.mxu0 }
  0xa3   :  { %v141_v45 = vadd.f32 %v140_v41, %v66_v43  ;;  %v333_v41 = vlaneseq }
  0xa5   :  { %v334_v43 = vshrl.u32 %v333_v41, 7 }
  0xa7   :  { %vm336_vm2 = vcmp.ge.s32.totalorder %v334_v43, 6  ;;  %v335_v50 = vadd.s32 8, %v334_v43 }
  0xa9   :  { %vm339_vm4 = vcmp.lt.s32.totalorder %v335_v50, 12 }
  0xaa   :  { %v143_v44 = vpop.f32.mrf.mxu0 }
  0xab   :  { %v144_v46 = vadd.f32 %v143_v44, %v71_v40  ;;  %v302_v44 = vpop.permute.xlu2 %301 }
  0xad   :  { %391 = vtanh.f32 %v144_v46 }
  0xae   :  { %393 = vtanh.f32 %v141_v45 }
  0xaf   :  { %395 = vtanh.f32 %v138_v47 }
  0xb0   :  { %397 = vtanh.f32 %v135_v49 }
  0xb1   :  { %399 = vtanh.f32 %v132_v52 }
  0xb2   :  { %401 = vtanh.f32 %v129_v54 }
  0xb3   :  { %v392_v53 = vpop.eup %391 }
  0xb4   :  { %251 = vmatpush.msra.mxu1 %v392_v53  ;;  %377 = vmatpush.msra.mxu3 %v392_v53  ;;  %v394_v55 = vpop.eup %393 }
  0xb5   :  { %v396_v56 = vpop.eup %395 }
  0xb6   :  { %252 = vmatpush.msra.mxu1 %v394_v55  ;;  %378 = vmatpush.msra.mxu3 %v394_v55  ;;  %v398_v57 = vpop.eup %397 }
  0xb7   :  { %v400_v58 = vpop.eup %399 }
  0xb8   :  { %253 = vmatpush.msra.mxu1 %v396_v56  ;;  %379 = vmatpush.msra.mxu3 %v396_v56  ;;  %v402_v61 = vpop.eup %401 }
  0xba   :  { %254 = vmatpush.msra.mxu1 %v398_v57  ;;  %380 = vmatpush.msra.mxu3 %v398_v57 }
  0xbc   :  { %255 = vmatpush.msra.mxu1 %v400_v58  ;;  %381 = vmatpush.msra.mxu3 %v400_v58 }
  0xbe   :  { %256 = vmatpush.msra.mxu1 %v402_v61  ;;  %382 = vmatpush.msra.mxu3 %v402_v61 }
  0xbf   :  { %364 = vmatmul.msk.f32.vlgmr.msra.gmra.mxu1 %vm216_vm1, %v160_v59  ;;  %369 = vmatmul.msk.f32.vlgmr.msra.gmra.mxu3 %vm216_vm1, %v165_v60 }
  0xc7   :  { %365 = vmatmul.msk.f32.gmra.mxu1 %vm216_vm1, %v161_v62  ;;  %370 = vmatmul.msk.f32.gmra.mxu3 %vm216_vm1, %v166_v63 }
  0xcf   :  { %366 = vmatmul.msk.f32.gmra.mxu1 %vm216_vm1, %v162_v0  ;;  %371 = vmatmul.msk.f32.gmra.mxu3 %vm216_vm1, %v167_v1 }
  0xd7   :  { %367 = vmatmul.msk.f32.gmra.mxu1 %vm216_vm1, %v163_v2 }
  0xdf   :  { %368 = vmatmul.msk.f32.gmra.mxu1 %vm216_vm1, %v164_v3 }
 0x13c   :  { %v258_v4 = vpop.f32.mrf.mxu1 }
 0x13d   :  { %v259_v30 = vadd.f32 %v258_v4, %v179_v29 }
 0x142   :  { %v273_v5 = vpop.f32.mrf.mxu3 }
 0x143   :  { %v274_v16 = vadd.f32 %v273_v5, %v204_v14 }
 0x144   :  { %v261_v6 = vpop.f32.mrf.mxu1 }
 0x145   :  { %v262_v28 = vadd.f32 %v261_v6, %v184_v27 }
 0x14a   :  { %v276_v7 = vpop.f32.mrf.mxu3 }
 0x14b   :  { %v277_v12 = vadd.f32 %v276_v7, %v209_v10 }
 0x14c   :  { %v264_v9 = vpop.f32.mrf.mxu1 }
 0x14d   :  { %v265_v26 = vadd.f32 %v264_v9, %v189_v24 }
 0x152   :  { %v279_v11 = vpop.f32.mrf.mxu3 }
 0x153   :  { %v280_v13 = vadd.f32 %v279_v11, %v214_v8 }
 0x154   :  { %v267_v15 = vpop.f32.mrf.mxu1 }
 0x155   :  { %403 = vtanh.f32 %v280_v13  ;;  %v268_v22 = vadd.f32 %v267_v15, %v194_v18 }
 0x156   :  { %405 = vtanh.f32 %v277_v12 }
 0x157   :  { %407 = vtanh.f32 %v274_v16 }
 0x15b   :  { %v404_v19 = vpop.eup %403 }
 0x15c   :  { %v270_v20 = vpop.f32.mrf.mxu1  ;;  %318 = vmatpush.msrb.mxu2 %v404_v19  ;;  %v406_v21 = vpop.eup %405 }
 0x15d   :  { %v271_v23 = vadd.f32 %v270_v20, %v199_v17  ;;  %v408_v25 = vpop.eup %407 }
 0x15e   :  { %319 = vmatpush.msrb.mxu2 %v406_v21 }
 0x15f   :  { %409 = vtanh.f32 %v271_v23 }
 0x160   :  { %320 = vmatpush.msrb.mxu2 %v408_v25  ;;  %411 = vtanh.f32 %v268_v22 }
 0x161   :  { %413 = vtanh.f32 %v265_v26 }
 0x162   :  { %415 = vtanh.f32 %v262_v28 }
 0x163   :  { %417 = vtanh.f32 %v259_v30 }
 0x165   :  { %v410_v31 = vpop.eup %409 }
 0x166   :  { %321 = vmatpush.msrb.mxu2 %v410_v31  ;;  %v412_v32 = vpop.eup %411 }
 0x167   :  { %v414_v33 = vpop.eup %413 }
 0x168   :  { %322 = vmatpush.msrb.mxu2 %v412_v32  ;;  %v416_v34 = vpop.eup %415 }
 0x169   :  { %v418_v36 = vpop.eup %417 }
 0x16a   :  { %323 = vmatpush.msrb.mxu2 %v414_v33 }
 0x16c   :  { %324 = vmatpush.msrb.mxu2 %v416_v34 }
 0x16e   :  { %325 = vmatpush.msrb.mxu2 %v418_v36 }
 0x16f   :  { %372 = vmatmul.msk.f32.vlgmr.msrb.gmra.mxu2 %vm216_vm1, %v290_v35 }
 0x177   :  { %373 = vmatmul.msk.f32.gmra.mxu2 %vm216_vm1, %v291_v37 }
 0x1f2   :  { %v327_v39 = vpop.f32.mrf.mxu2 }
 0x1f3   :  { %v328_v40 = vadd.f32 %v327_v39, %v297_v38 }
 0x1f5   :  { %v342_v42 = vmul.f32 1.442695, %v328_v40 }
 0x1f7   :  { %419 = vpow2.f32 %v342_v42 }
 0x1fa   :  { %v330_v45 = vpop.f32.mrf.mxu2 }
 0x1fb   :  { %v331_v46 = vadd.f32 %v330_v45, %v302_v44 }
 0x1fd   :  { %v420_v47 = vpop.eup %419  ;;  %v344_v48 = vmul.f32 1.442695, %v331_v46 }
 0x1fe   :  { %v346_v49 = vsel %vm336_vm2, %v420_v47, %v328_v40 }
 0x1ff   :  { %349 = vst.msk [vmem:[%s608_s7] sm:$0xff] %vm348_vm3, %v346_v49  ;;  %421 = vpow2.f32 %v344_v48 }
 0x205   :  { %v422_v51 = vpop.eup %421 }
 0x206   :  { %v347_v52 = vsel %vm339_vm4, %v422_v51, %v331_v46 }
 0x207   :  { %350 = vst.msk [vmem:[%s608_s7 + $0x8] sm:$0xff] %vm348_vm3, %v347_v52 }

</bundles_post_ra>
